<compile_context>
chip_gen: v7x
topology: tpu7x:2x2x1
jax: 0.10.0
libtpu: 0.0.40
codegen_flags: <defaults>
</compile_context>

<pallas_src>
import jax
import jax.numpy as jnp
from jax.experimental import pallas as pl
from jax.experimental.pallas import tpu as pltpu


def _round_up(n: int, m: int) -> int:
    return (n + m - 1) // m * m


def _vmem_budget_bytes() -> int:
    """~75% of physical VMEM; conservative fallback that fits v7x (64 MiB)."""
    try:
        return int(pltpu.get_tpu_info().vmem_capacity_bytes) * 3 // 4
    except Exception:
        return 48 << 20


def _pick_tb(B, F_pad, C_pad, itemsize, budget, resident_bytes):
    """Largest batch tile (multiple of 8, <= 1024) whose double-buffered x/out
    tiles fit the VMEM budget; keep the grid >= 2 steps when B allows so the
    "parallel" axis has work to shard across v7x's two TensorCores."""
    if B < 8:
        return B                                  # full-extent block (legal)
    cap = min(1024, B)
    if B >= 16:
        cap = min(cap, pl.cdiv(B, 2))             # at least 2 grid steps
    cap = max(8, (cap // 8) * 8)
    per_row = 2 * (F_pad + C_pad) * itemsize      # double-buffered x + out per row
    avail = max(budget - resident_bytes, 8 * per_row)
    fit = max(8, (avail // per_row) // 8 * 8)
    return int(min(cap, fit))


def logistic_kernel(x_ref, wt_ref, b_ref, o_ref):
    # MXU matmul with f32 accumulation; inputs consumed in their native dtype.
    logits = jnp.dot(x_ref[...], wt_ref[...],
                     preferred_element_type=jnp.float32)       # [TB, C_pad] f32
    logits = logits + b_ref[...]                               # bias [1, C_pad]
    # Numerically-stable softmax over the (lane) class axis. Padded classes
    # carry bias = -1e30 -> exp underflows to 0, so they do not contribute.
    m = jnp.max(logits, axis=-1, keepdims=True)
    e = jnp.exp(logits - m)
    denom = jnp.sum(e, axis=-1, keepdims=True)
    # Exact divide (approx reciprocal's ~1e-3 error failed the reference check;
    # the divide is off the critical path for this memory-bound kernel).
    o_ref[...] = (e / denom).astype(o_ref.dtype)


def logistic_moduler(x, weight, bias, *, tb=None):
    """softmax(x @ weight.T + bias, axis=-1) as a single Pallas kernel.

    x: [B, F], weight: [C, F] (PyTorch nn.Linear convention), bias: [C] -> [B, C].
    """
    B, F = x.shape
    C = weight.shape[0]

    # Lane padding: unmasked stores, full MXU N dimension, 128-aligned K feed.
    F_pad = _round_up(F, 128)
    C_pad = _round_up(C, 128)

    # TODO(synk): under jit in a real training/serving loop, hoist the W
    # transpose/pad and bias pad to parameter-setup time (once, not per call).
    w_t = jnp.transpose(weight)                                # [F, C]
    if (F_pad, C_pad) != (F, C):
        w_t = jnp.pad(w_t, ((0, F_pad - F), (0, C_pad - C)))   # zeros: no logit effect
    x_p = jnp.pad(x, ((0, 0), (0, F_pad - F))) if F_pad != F else x
    bias2d = bias.reshape(1, C).astype(jnp.float32)
    if C_pad != C:
        # Large negative (NOT 0, NOT -inf): padded classes get probability 0
        # without NaN risk through later casts.
        bias2d = jnp.pad(bias2d, ((0, 0), (0, C_pad - C)), constant_values=-1e30)

    itemsize = x_p.dtype.itemsize
    budget = _vmem_budget_bytes()
    # Resident W^T + bias; budget for worst case (double-buffered) so the tile
    # choice is safe even if single-buffering is unavailable.
    resident = 2 * (F_pad * C_pad * w_t.dtype.itemsize + C_pad * 4)
    if tb is None:
        tb = _pick_tb(B, F_pad, C_pad, itemsize, budget, resident)
    grid = (pl.cdiv(B, tb),)
    # Note: a partial last batch tile computes softmax on padded garbage rows;
    # Pallas masks the writeback, so any inf/NaN there is discarded (harmless).

    # Need-driven, capacity-clamped VMEM limit (never below the actual need).
    inflight = 2 * tb * (F_pad + C_pad) * itemsize
    need = resident + inflight
    vmem_limit = int(min(max(2 * need, 8 << 20), budget))
    vmem_limit = max(vmem_limit, need + (1 << 20))

    cost = pl.CostEstimate(
        flops=2 * B * F * C,
        transcendentals=B * C,
        bytes_accessed=(x_p.size * itemsize + w_t.size * w_t.dtype.itemsize
                        + bias2d.size * 4 + B * C_pad * itemsize),
    )

    def call(single_buffer_resident: bool):
        if single_buffer_resident:
            # Loop-invariant blocks: 1 buffer instead of 2 halves the resident
            # W footprint (matters most on v7x's 64 MiB VMEM).
            wt_spec = pl.BlockSpec((F_pad, C_pad), lambda i: (0, 0),
                                   pipeline_mode=pl.Buffered(1))
            b_spec = pl.BlockSpec((1, C_pad), lambda i: (0, 0),
                                  pipeline_mode=pl.Buffered(1))
        else:
            wt_spec = pl.BlockSpec((F_pad, C_pad), lambda i: (0, 0))
            b_spec = pl.BlockSpec((1, C_pad), lambda i: (0, 0))
        return pl.pallas_call(
            logistic_kernel,
            out_shape=jax.ShapeDtypeStruct((B, C_pad), x.dtype),
            grid_spec=pltpu.PrefetchScalarGridSpec(
                num_scalar_prefetch=0,
                grid=grid,
                in_specs=[
                    pl.BlockSpec((tb, F_pad), lambda i: (i, 0)),  # x: streamed over batch
                    wt_spec,                                      # W^T: VMEM-resident
                    b_spec,                                       # bias: VMEM-resident
                ],
                out_specs=pl.BlockSpec((tb, C_pad), lambda i: (i, 0)),
            ),
            compiler_params=pltpu.CompilerParams(
                dimension_semantics=("parallel",),                # independent batch tiles
                vmem_limit_bytes=vmem_limit,
            ),
            cost_estimate=cost,
        )(x_p, w_t, bias2d)

    try:
        out_pad = call(single_buffer_resident=hasattr(pl, "Buffered"))
    except Exception:
        # Fallback for jax versions without BlockSpec(pipeline_mode=...):
        # identical semantics, default double-buffered W/bias.
        out_pad = call(single_buffer_resident=False)

    return out_pad[:, :C]


if __name__ == "__main__":
    # Small shapes consistent with the module: num_feature=32, num_class=8, batch=8.
    B, F, C = 8, 32, 8
    key = jax.random.PRNGKey(0)
    kx, kw, kb = jax.random.split(key, 3)

    x = jax.random.normal(kx, (B, F), dtype=jnp.float32)
    # Deterministic parameter init mimicking nn.Linear's uniform(-1/sqrt(F), 1/sqrt(F)).
    bound = 1.0 / (F ** 0.5)
    weight = jax.random.uniform(kw, (C, F), dtype=jnp.float32, minval=-bound, maxval=bound)
    bias = jax.random.uniform(kb, (C,), dtype=jnp.float32, minval=-bound, maxval=bound)

    out = logistic_moduler(x, weight, bias)
    out = jax.block_until_ready(out)

    # Sanity check against pure-JAX reference.
    ref = jax.nn.softmax(x @ weight.T + bias, axis=-1)
    assert out.shape == (B, C)
    assert jnp.allclose(out, ref, atol=1e-4, rtol=1e-4), "mismatch vs reference"

    print("KERNEL_OK")
</pallas_src>

<mosaic_0001>
module attributes {stable_mosaic.version = 11 : i64} {
  func.func @logistic_kernel(%arg0: i32, %arg1: memref<8x128xf32, #tpu.memory_space<vmem>>, %arg2: memref<128x128xf32, #tpu.memory_space<vmem>>, %arg3: memref<1x128xf32, #tpu.memory_space<vmem>>, %arg4: memref<8x128xf32, #tpu.memory_space<vmem>>) attributes {dimension_semantics = [#tpu.dimension_semantics<parallel>], iteration_bounds = array<i64: 1>, scalar_prefetch = 0 : i64, scratch_operands = 0 : i64, tpu.core_type = #tpu.core_type<tc>, window_params = [{transform_indices = @transform_0, window_bounds = array<i64: 8, 128>}, {pipeline_mode = #tpu.pipeline_mode<synchronous>, transform_indices = @transform_1, window_bounds = array<i64: 128, 128>}, {pipeline_mode = #tpu.pipeline_mode<synchronous>, transform_indices = @transform_2, window_bounds = array<i64: 1, 128>}, {transform_indices = @transform_3, window_bounds = array<i64: 8, 128>}]} {
    %c0 = arith.constant 0 : index
    %c0_0 = arith.constant 0 : index
    %0 = vector.load %arg1[%c0, %c0_0] : memref<8x128xf32, #tpu.memory_space<vmem>>, vector<8x128xf32>
    %c0_1 = arith.constant 0 : index
    %c0_2 = arith.constant 0 : index
    %1 = vector.load %arg2[%c0_1, %c0_2] : memref<128x128xf32, #tpu.memory_space<vmem>>, vector<128x128xf32>
    %cst = arith.constant dense<0.000000e+00> : vector<8x128xf32>
    %2 = tpu.matmul %0, %1, %cst {dimension_numbers = #tpu.dot_dimension_numbers<[1], [0], [0], [1], [0, 0, 1, 1], [], []>} : vector<8x128xf32>, vector<128x128xf32>, vector<8x128xf32> -> vector<8x128xf32>
    %c0_3 = arith.constant 0 : index
    %c0_4 = arith.constant 0 : index
    %3 = vector.load %arg3[%c0_3, %c0_4] : memref<1x128xf32, #tpu.memory_space<vmem>>, vector<1x128xf32>
    %4 = vector.broadcast %3 : vector<1x128xf32> to vector<8x128xf32>
    %5 = arith.addf %2, %4 : vector<8x128xf32>
    %cst_5 = arith.constant dense<0xFF800000> : vector<8xf32>
    %6 = vector.multi_reduction <maximumf>, %5, %cst_5 [1] : vector<8x128xf32> to vector<8xf32>
    %7 = vector.shape_cast %6 : vector<8xf32> to vector<8x1xf32>
    %8 = vector.broadcast %7 : vector<8x1xf32> to vector<8x128xf32>
    %9 = arith.subf %5, %8 : vector<8x128xf32>
    %10 = math.exp %9 : vector<8x128xf32>
    %cst_6 = arith.constant dense<0.000000e+00> : vector<8xf32>
    %11 = vector.multi_reduction <add>, %10, %cst_6 [1] : vector<8x128xf32> to vector<8xf32>
    %12 = vector.shape_cast %11 : vector<8xf32> to vector<8x1xf32>
    %13 = vector.broadcast %12 : vector<8x1xf32> to vector<8x128xf32>
    %14 = arith.divf %10, %13 : vector<8x128xf32>
    %c0_7 = arith.constant 0 : index
    %c0_8 = arith.constant 0 : index
    %15 = vector.load %arg4[%c0_7, %c0_8] : memref<8x128xf32, #tpu.memory_space<vmem>>, vector<8x128xf32>
    tpu.vector_store %arg4[%c0_7, %c0_8], %14 {strides = array<i32>} : memref<8x128xf32, #tpu.memory_space<vmem>>, vector<8x128xf32>,
    return
  }
  func.func @transform_0(%arg0: i32) -> (i32, i32) {
    %c0_i32 = arith.constant 0 : i32
    %c0_i32_0 = arith.constant 0 : i32
    return %arg0, %c0_i32 : i32, i32
  }
  func.func @transform_1(%arg0: i32) -> (i32, i32) {
    %c0_i32 = arith.constant 0 : i32
    %c0_i32_0 = arith.constant 0 : i32
    %c0_i32_1 = arith.constant 0 : i32
    return %c0_i32, %c0_i32_0 : i32, i32
  }
  func.func @transform_2(%arg0: i32) -> (i32, i32) {
    %c0_i32 = arith.constant 0 : i32
    %c0_i32_0 = arith.constant 0 : i32
    %c0_i32_1 = arith.constant 0 : i32
    return %c0_i32, %c0_i32_0 : i32, i32
  }
  func.func @transform_3(%arg0: i32) -> (i32, i32) {
    %c0_i32 = arith.constant 0 : i32
    %c0_i32_0 = arith.constant 0 : i32
    return %arg0, %c0_i32 : i32, i32
  }
}

module attributes {stable_mosaic.version = 11 : i64} {
  func.func @logistic_kernel(%arg0: i32, %arg1: memref<8x128xf32, #tpu.memory_space<vmem>>, %arg2: memref<128x128xf32, #tpu.memory_space<vmem>>, %arg3: memref<1x128xf32, #tpu.memory_space<vmem>>, %arg4: memref<8x128xf32, #tpu.memory_space<vmem>>) attributes {dimension_semantics = [#tpu.dimension_semantics<parallel>], iteration_bounds = array<i64: 1>, scalar_prefetch = 0 : i64, scratch_operands = 0 : i64, tpu.core_type = #tpu.core_type<tc>, window_params = [{transform_indices = @transform_0, window_bounds = array<i64: 8, 128>}, {pipeline_mode = #tpu.pipeline_mode<synchronous>, transform_indices = @transform_1, window_bounds = array<i64: 128, 128>}, {pipeline_mode = #tpu.pipeline_mode<synchronous>, transform_indices = @transform_2, window_bounds = array<i64: 1, 128>}, {transform_indices = @transform_3, window_bounds = array<i64: 8, 128>}]} {
    %c0 = arith.constant 0 : index
    %c0_0 = arith.constant 0 : index
    %0 = vector.load %arg1[%c0, %c0_0] : memref<8x128xf32, #tpu.memory_space<vmem>>, vector<8x128xf32>
    %c0_1 = arith.constant 0 : index
    %c0_2 = arith.constant 0 : index
    %1 = vector.load %arg2[%c0_1, %c0_2] : memref<128x128xf32, #tpu.memory_space<vmem>>, vector<128x128xf32>
    %cst = arith.constant dense<0.000000e+00> : vector<8x128xf32>
    %2 = tpu.matmul %0, %1, %cst {dimension_numbers = #tpu.dot_dimension_numbers<[1], [0], [0], [1], [0, 0, 1, 1], [], []>} : vector<8x128xf32>, vector<128x128xf32>, vector<8x128xf32> -> vector<8x128xf32>
    %c0_3 = arith.constant 0 : index
    %c0_4 = arith.constant 0 : index
    %3 = vector.load %arg3[%c0_3, %c0_4] : memref<1x128xf32, #tpu.memory_space<vmem>>, vector<1x128xf32>
    %4 = vector.broadcast %3 : vector<1x128xf32> to vector<8x128xf32>
    %5 = arith.addf %2, %4 : vector<8x128xf32>
    %cst_5 = arith.constant dense<0xFF800000> : vector<8xf32>
    %6 = vector.multi_reduction <maximumf>, %5, %cst_5 [1] : vector<8x128xf32> to vector<8xf32>
    %7 = vector.shape_cast %6 : vector<8xf32> to vector<8x1xf32>
    %8 = vector.broadcast %7 : vector<8x1xf32> to vector<8x128xf32>
    %9 = arith.subf %5, %8 : vector<8x128xf32>
    %10 = math.exp %9 : vector<8x128xf32>
    %cst_6 = arith.constant dense<0.000000e+00> : vector<8xf32>
    %11 = vector.multi_reduction <add>, %10, %cst_6 [1] : vector<8x128xf32> to vector<8xf32>
    %12 = vector.shape_cast %11 : vector<8xf32> to vector<8x1xf32>
    %13 = vector.broadcast %12 : vector<8x1xf32> to vector<8x128xf32>
    %14 = arith.divf %10, %13 : vector<8x128xf32>
    %c0_7 = arith.constant 0 : index
    %c0_8 = arith.constant 0 : index
    %15 = vector.load %arg4[%c0_7, %c0_8] : memref<8x128xf32, #tpu.memory_space<vmem>>, vector<8x128xf32>
    tpu.vector_store %arg4[%c0_7, %c0_8], %14 {strides = array<i32>} : memref<8x128xf32, #tpu.memory_space<vmem>>, vector<8x128xf32>,
    return
  }
  func.func @transform_0(%arg0: i32) -> (i32, i32) {
    %c0_i32 = arith.constant 0 : i32
    %c0_i32_0 = arith.constant 0 : i32
    return %arg0, %c0_i32 : i32, i32
  }
  func.func @transform_1(%arg0: i32) -> (i32, i32) {
    %c0_i32 = arith.constant 0 : i32
    %c0_i32_0 = arith.constant 0 : i32
    %c0_i32_1 = arith.constant 0 : i32
    return %c0_i32, %c0_i32_0 : i32, i32
  }
  func.func @transform_2(%arg0: i32) -> (i32, i32) {
    %c0_i32 = arith.constant 0 : i32
    %c0_i32_0 = arith.constant 0 : i32
    %c0_i32_1 = arith.constant 0 : i32
    return %c0_i32, %c0_i32_0 : i32, i32
  }
  func.func @transform_3(%arg0: i32) -> (i32, i32) {
    %c0_i32 = arith.constant 0 : i32
    %c0_i32_0 = arith.constant 0 : i32
    return %arg0, %c0_i32 : i32, i32
  }
}

</mosaic_0001>

<bundles_post_ra>
// kernel: tpu_custom_call.1
= control target key start
LH: loop header
LB: loop body
LE: loop exit
PB: predicated region body
PF: predicated region fallthrough
CT: control target
= control target key end

     0   :  { %8 = vsyncpa [#allocation3], 0  ;;  %s396_s0 = inlined_call_operand.hbm [shape: f32[8,128], index: 0, kind: input, shape index: {}]   ;;  %s397_s1 = inlined_call_operand.hbm [shape: f32[128,128], index: 1, kind: input, shape index: {}]   ;;  %s398_s2 = inlined_call_operand.vmem [shape: f32[1,128], index: 2, kind: input, shape index: {}]   ;;  %s399_s3 = inlined_call_operand.hbm [shape: f32[8,128], index: 3, kind: output, shape index: {}]  }
   0x1   :  { %9 = vsyncpa [#allocation6], 0 }
   0x2   :  { %10 = vsyncpa [#allocation4], 0  ;;  %s322_s12 = smov [#allocation2]   ;;  %s323_s14 = smov [#allocation5]  }
   0x3   :  { %s17_s13 = sshll.u32 %s322_s12, 4  ;;  %s26_s15 = sshll.u32 %s323_s14, 4  ;;  %s18_s13 = int_to_ptr.vmem [resolvable:$true] %s17_s13  ;;  %s350_s15 = int_to_ptr.vmem [resolvable:$true] %s26_s15 }
   0x4   :  { %s250_s18 = scalar_lea.hbm %s396_s0, 128 }
   0x5   :  { %p251_p0 = scmp.ne.s32.totalorder %s396_s0, %s250_s18  ;;  %p254_p1 = scmp.lt.u32.totalorder %s250_s18, %s396_s0 }
   0x7   :  { %p256_p2 = pnand %p254_p1, %p251_p0 }
   0x9   :  { %259 = shalt.err (!%p256_p2)
}
   0xa   :  { %s260_s23 = scalar_lea.vmem %s18_s13, 128  ;;  %p265_p4 = scmp.lt.s32.totalorder %s18_s13, %s18_s13 }
   0xb   :  { %p261_p3 = scmp.ne.s32.totalorder %s18_s13, %s260_s23  ;;  %p266_p5 = scmp.lt.s32.totalorder %s260_s23, %s260_s23 }
   0xd   :  { %p267_p6 = por %p266_p5, %p265_p4 }
   0xf   :  { %p268_p7 = pnand %p267_p6, %p261_p3 }
  0x11   :  { %271 = shalt.err (!%p268_p7)
}
  0x12   :  { %20 = dma.hbm_to_vmem [thread:$0]  %s396_s0, 128, %s18_s13, [#allocation3]  }
  0x13   :  { %s272_s28 = scalar_lea.hbm %s397_s1, 2048 }
  0x14   :  { %p273_p8 = scmp.ne.s32.totalorder %s397_s1, %s272_s28  ;;  %p276_p9 = scmp.lt.u32.totalorder %s272_s28, %s397_s1 }
  0x16   :  { %p278_p10 = pnand %p276_p9, %p273_p8 }
  0x18   :  { %281 = shalt.err (!%p278_p10)
}
  0x19   :  { %s282_s6 = scalar_lea.vmem %s350_s15, 2048  ;;  %p287_p12 = scmp.lt.s32.totalorder %s350_s15, %s350_s15 }
  0x1a   :  { %p283_p11 = scmp.ne.s32.totalorder %s350_s15, %s282_s6  ;;  %p288_p13 = scmp.lt.s32.totalorder %s282_s6, %s282_s6 }
  0x1c   :  { %p289_p0 = por %p288_p13, %p287_p12 }
  0x1e   :  { %p290_p1 = pnand %p289_p0, %p283_p11 }
  0x20   :  { %293 = shalt.err (!%p290_p1)
}
  0x21   :  { %s324_s0 = smov 128   ;;  %s325_s7 = smov 8  }
  0x22   :  { %32 = dma.hbm_to_vmem [thread:$0]  %s397_s1, 2048, %s350_s15, [#allocation6], %s324_s0, %s324_s0, %s325_s7  }
  0x23   :  { %316 = dma.done.wait [#allocation3], 128  }
  0x24   :  { %317 = vsyncadd [#allocation3], 4294967168 }
  0x25   :  { %318 = dma.done.wait [#allocation6], 2048  }
  0x26   :  { %319 = vsyncadd [#allocation6], 4294965248  ;;  %v326_v0 = vmov 0.0|0.0   ;;  %vm327_vm0 = vmmov 0   ;;  %v328_v1 = vmov 0.0   ;;  %v42_v2 = vld [vmem:[#allocation5] sm:$0xff] }
  0x27   :  { %214 = vmatprep.subr.bf16.mxu0 %v326_v0  ;;  %211 = vmatprep.mubr.msk.f32.mxu0 %vm327_vm0, %v328_v1  ;;  %v43_v3 = vld [vmem:[#allocation5 + $0x8] sm:$0xff]  ;;  %v44_v4 = vld [vmem:[#allocation5 + $0x10] sm:$0xff]  ;;  %v45_v6 = vld [vmem:[#allocation5 + $0x18] sm:$0xff]  ;;  %s329_s11 = smov [#allocation7]  }
  0x28   :  { %v215_v5 = vpack.c.bf16 %v43_v3, %v42_v2  ;;  %v218_v7 = vpack.c.bf16 %v45_v6, %v44_v4  ;;  %v46_v8 = vld [vmem:[#allocation5 + $0x20] sm:$0xff]  ;;  %v47_v9 = vld [vmem:[#allocation5 + $0x28] sm:$0xff]  ;;  %v48_v11 = vld [vmem:[#allocation5 + $0x30] sm:$0xff]  ;;  %s151_s12 = sshll.u32 %s329_s11, 4  ;;  %s152_s12 = int_to_ptr.vmem [resolvable:$true] %s151_s12 }
  0x29   :  { %v221_v10 = vpack.c.bf16 %v47_v9, %v46_v8  ;;  %v49_v12 = vld [vmem:[#allocation5 + $0x38] sm:$0xff]  ;;  %v50_v14 = vld [vmem:[#allocation5 + $0x40] sm:$0xff]  ;;  %v51_v15 = vld [vmem:[#allocation5 + $0x48] sm:$0xff]  ;;  %s294_s13 = scalar_lea.vmem %s152_s12, 128  ;;  %p299_p3 = scmp.lt.s32.totalorder %s152_s12, %s152_s12 }
  0x2a   :  { %216 = vmatpush3.bf16.msra.mxu0 %v215_v5  ;;  %v224_v13 = vpack.c.bf16 %v49_v12, %v48_v11  ;;  %v227_v16 = vpack.c.bf16 %v51_v15, %v50_v14  ;;  %v52_v17 = vld [vmem:[#allocation5 + $0x50] sm:$0xff]  ;;  %v53_v18 = vld [vmem:[#allocation5 + $0x58] sm:$0xff]  ;;  %v54_v20 = vld [vmem:[#allocation5 + $0x60] sm:$0xff]  ;;  %p295_p2 = scmp.ne.s32.totalorder %s152_s12, %s294_s13  ;;  %p300_p4 = scmp.lt.s32.totalorder %s294_s13, %s294_s13 }
  0x2b   :  { %217 = vmatprep.subr.bf16.mxu0 %v326_v0  ;;  %v230_v19 = vpack.c.bf16 %v53_v18, %v52_v17  ;;  %v55_v21 = vld [vmem:[#allocation5 + $0x68] sm:$0xff]  ;;  %v56_v23 = vld [vmem:[#allocation5 + $0x70] sm:$0xff]  ;;  %v57_v24 = vld [vmem:[#allocation5 + $0x78] sm:$0xff] }
  0x2c   :  { %v233_v22 = vpack.c.bf16 %v55_v21, %v54_v20  ;;  %v236_v25 = vpack.c.bf16 %v57_v24, %v56_v23  ;;  %v41_v26 = vld [vmem:[#allocation2] sm:$0xff]  ;;  %p301_p5 = por %p300_p4, %p299_p3 }
  0x2d   :  { %v161_v27 = vld [vmem:[%s398_s2] ss:$0 sm:$0xff] }
  0x2e   :  { %219 = vmatpush3.bf16.msra.mxu0 %v218_v7  ;;  %p302_p6 = pnand %p301_p5, %p295_p2 }
  0x2f   :  { %220 = vmatprep.subr.bf16.mxu0 %v326_v0 }
  0x32   :  { %222 = vmatpush3.bf16.msra.mxu0 %v221_v10 }
  0x33   :  { %223 = vmatprep.subr.bf16.mxu0 %v326_v0 }
  0x36   :  { %225 = vmatpush3.bf16.msra.mxu0 %v224_v13 }
  0x37   :  { %226 = vmatprep.subr.bf16.mxu0 %v326_v0 }
  0x3a   :  { %228 = vmatpush3.bf16.msra.mxu0 %v227_v16 }
  0x3b   :  { %229 = vmatprep.subr.bf16.mxu0 %v326_v0 }
  0x3e   :  { %231 = vmatpush3.bf16.msra.mxu0 %v230_v19 }
  0x3f   :  { %232 = vmatprep.subr.bf16.mxu0 %v326_v0 }
  0x42   :  { %234 = vmatpush3.bf16.msra.mxu0 %v233_v22 }
  0x43   :  { %235 = vmatprep.subr.bf16.mxu0 %v326_v0 }
  0x46   :  { %237 = vmatpush3.bf16.msra.mxu0 %v236_v25 }
  0x49   :  { %212 = vmatmul.mubr.f32.vlgmr.msra.gmra.mrb[0].mxu0 %v41_v26 }
 0x11c   :  { %v131_v28 = vpop.f32.mrb[0].mxu0 }
 0x11d   :  { %v132_v29 = vadd.f32 %v161_v27, %v131_v28  ;;  %v213_v30 = vpop.f32.mrb[1].mxu0 }
 0x11f   :  { %135 = vmax.xlane.f32.xlu0 %v132_v29 }
 0x1ac   :  { %v136_v31 = vpop.xlane.xlu0 %135 }
 0x1ad   :  { %v137_v32 = vsub.f32 %v132_v29, %v136_v31 }
 0x1af   :  { %v138_v33 = vmul.f32 1.442695, %v137_v32 }
 0x1b1   :  { %246 = vpow2.f32 %v138_v33 }
 0x1bb   :  { %v247_v34 = vpop.eup %246 }
 0x1bc   :  { %140 = vadd.xlane.f32.xlu0 %v247_v34 }
 0x249   :  { %v141_v35 = vpop.xlane.xlu0 %140 }
 0x24a   :  { %248 = vrcp.f32 %v141_v35 }
 0x254   :  { %v249_v36 = vpop.eup %248 }
 0x255   :  { %v143_v37 = vmul.f32 %v249_v36, %v247_v34 }
 0x257   :  { %144 = vst [vmem:[#allocation7] sm:$0xff] %v143_v37 }
 0x258   :  { %305 = shalt.err (!%p302_p6)
}
 0x259   :  { %s306_s15 = scalar_lea.hbm %s399_s3, 128 }
 0x25a   :  { %p307_p7 = scmp.ne.s32.totalorder %s399_s3, %s306_s15  ;;  %p310_p8 = scmp.lt.u32.totalorder %s306_s15, %s399_s3 }
 0x25c   :  { %p312_p9 = pnand %p310_p8, %p307_p7 }
 0x25e   :  { %315 = shalt.err (!%p312_p9)
}
 0x25f   :  { %154 = dma.vmem_to_hbm [thread:$0]  %s152_s12, 128, %s399_s3, [#allocation4]  }
 0x260   :  { %320 = dma.done.wait [#allocation4], 128  }
 0x261   :  { %321 = vsyncadd [#allocation4], 4294967168 }
 0x262   :  { %158 = vsyncpa [#allocation3], 1 }
 0x263   :  { %159 = vsyncpa [#allocation6], 1 }
 0x264   :  { %160 = vsyncpa [#allocation4], 1 }

// kernel: tpu_custom_call.1
= control target key start
LH: loop header
LB: loop body
LE: loop exit
PB: predicated region body
PF: predicated region fallthrough
CT: control target
= control target key end

     0   :  { %8 = vsyncpa [#allocation3], 0  ;;  %s396_s0 = inlined_call_operand.hbm [shape: f32[8,128], index: 0, kind: input, shape index: {}]   ;;  %s397_s1 = inlined_call_operand.hbm [shape: f32[128,128], index: 1, kind: input, shape index: {}]   ;;  %s398_s2 = inlined_call_operand.vmem [shape: f32[1,128], index: 2, kind: input, shape index: {}]   ;;  %s399_s3 = inlined_call_operand.hbm [shape: f32[8,128], index: 3, kind: output, shape index: {}]  }
   0x1   :  { %9 = vsyncpa [#allocation6], 0 }
   0x2   :  { %10 = vsyncpa [#allocation4], 0  ;;  %s322_s12 = smov [#allocation2]   ;;  %s323_s14 = smov [#allocation5]  }
   0x3   :  { %s17_s13 = sshll.u32 %s322_s12, 4  ;;  %s26_s15 = sshll.u32 %s323_s14, 4  ;;  %s18_s13 = int_to_ptr.vmem [resolvable:$true] %s17_s13  ;;  %s350_s15 = int_to_ptr.vmem [resolvable:$true] %s26_s15 }
   0x4   :  { %s250_s18 = scalar_lea.hbm %s396_s0, 128 }
   0x5   :  { %p251_p0 = scmp.ne.s32.totalorder %s396_s0, %s250_s18  ;;  %p254_p1 = scmp.lt.u32.totalorder %s250_s18, %s396_s0 }
   0x7   :  { %p256_p2 = pnand %p254_p1, %p251_p0 }
   0x9   :  { %259 = shalt.err (!%p256_p2)
}
   0xa   :  { %s260_s23 = scalar_lea.vmem %s18_s13, 128  ;;  %p265_p4 = scmp.lt.s32.totalorder %s18_s13, %s18_s13 }
   0xb   :  { %p261_p3 = scmp.ne.s32.totalorder %s18_s13, %s260_s23  ;;  %p266_p5 = scmp.lt.s32.totalorder %s260_s23, %s260_s23 }
   0xd   :  { %p267_p6 = por %p266_p5, %p265_p4 }
   0xf   :  { %p268_p7 = pnand %p267_p6, %p261_p3 }
  0x11   :  { %271 = shalt.err (!%p268_p7)
}
  0x12   :  { %20 = dma.hbm_to_vmem [thread:$0]  %s396_s0, 128, %s18_s13, [#allocation3]  }
  0x13   :  { %s272_s28 = scalar_lea.hbm %s397_s1, 2048 }
  0x14   :  { %p273_p8 = scmp.ne.s32.totalorder %s397_s1, %s272_s28  ;;  %p276_p9 = scmp.lt.u32.totalorder %s272_s28, %s397_s1 }
  0x16   :  { %p278_p10 = pnand %p276_p9, %p273_p8 }
  0x18   :  { %281 = shalt.err (!%p278_p10)
}
  0x19   :  { %s282_s6 = scalar_lea.vmem %s350_s15, 2048  ;;  %p287_p12 = scmp.lt.s32.totalorder %s350_s15, %s350_s15 }
  0x1a   :  { %p283_p11 = scmp.ne.s32.totalorder %s350_s15, %s282_s6  ;;  %p288_p13 = scmp.lt.s32.totalorder %s282_s6, %s282_s6 }
  0x1c   :  { %p289_p0 = por %p288_p13, %p287_p12 }
  0x1e   :  { %p290_p1 = pnand %p289_p0, %p283_p11 }
  0x20   :  { %293 = shalt.err (!%p290_p1)
}
  0x21   :  { %s324_s0 = smov 128   ;;  %s325_s7 = smov 8  }
  0x22   :  { %32 = dma.hbm_to_vmem [thread:$0]  %s397_s1, 2048, %s350_s15, [#allocation6], %s324_s0, %s324_s0, %s325_s7  }
  0x23   :  { %316 = dma.done.wait [#allocation3], 128  }
  0x24   :  { %317 = vsyncadd [#allocation3], 4294967168 }
  0x25   :  { %318 = dma.done.wait [#allocation6], 2048  }
  0x26   :  { %319 = vsyncadd [#allocation6], 4294965248  ;;  %v326_v0 = vmov 0.0|0.0   ;;  %vm327_vm0 = vmmov 0   ;;  %v328_v1 = vmov 0.0   ;;  %v42_v2 = vld [vmem:[#allocation5] sm:$0xff] }
  0x27   :  { %214 = vmatprep.subr.bf16.mxu0 %v326_v0  ;;  %211 = vmatprep.mubr.msk.f32.mxu0 %vm327_vm0, %v328_v1  ;;  %v43_v3 = vld [vmem:[#allocation5 + $0x8] sm:$0xff]  ;;  %v44_v4 = vld [vmem:[#allocation5 + $0x10] sm:$0xff]  ;;  %v45_v6 = vld [vmem:[#allocation5 + $0x18] sm:$0xff]  ;;  %s329_s11 = smov [#allocation7]  }
  0x28   :  { %v215_v5 = vpack.c.bf16 %v43_v3, %v42_v2  ;;  %v218_v7 = vpack.c.bf16 %v45_v6, %v44_v4  ;;  %v46_v8 = vld [vmem:[#allocation5 + $0x20] sm:$0xff]  ;;  %v47_v9 = vld [vmem:[#allocation5 + $0x28] sm:$0xff]  ;;  %v48_v11 = vld [vmem:[#allocation5 + $0x30] sm:$0xff]  ;;  %s151_s12 = sshll.u32 %s329_s11, 4  ;;  %s152_s12 = int_to_ptr.vmem [resolvable:$true] %s151_s12 }
  0x29   :  { %v221_v10 = vpack.c.bf16 %v47_v9, %v46_v8  ;;  %v49_v12 = vld [vmem:[#allocation5 + $0x38] sm:$0xff]  ;;  %v50_v14 = vld [vmem:[#allocation5 + $0x40] sm:$0xff]  ;;  %v51_v15 = vld [vmem:[#allocation5 + $0x48] sm:$0xff]  ;;  %s294_s13 = scalar_lea.vmem %s152_s12, 128  ;;  %p299_p3 = scmp.lt.s32.totalorder %s152_s12, %s152_s12 }
  0x2a   :  { %216 = vmatpush3.bf16.msra.mxu0 %v215_v5  ;;  %v224_v13 = vpack.c.bf16 %v49_v12, %v48_v11  ;;  %v227_v16 = vpack.c.bf16 %v51_v15, %v50_v14  ;;  %v52_v17 = vld [vmem:[#allocation5 + $0x50] sm:$0xff]  ;;  %v53_v18 = vld [vmem:[#allocation5 + $0x58] sm:$0xff]  ;;  %v54_v20 = vld [vmem:[#allocation5 + $0x60] sm:$0xff]  ;;  %p295_p2 = scmp.ne.s32.totalorder %s152_s12, %s294_s13  ;;  %p300_p4 = scmp.lt.s32.totalorder %s294_s13, %s294_s13 }
  0x2b   :  { %217 = vmatprep.subr.bf16.mxu0 %v326_v0  ;;  %v230_v19 = vpack.c.bf16 %v53_v18, %v52_v17  ;;  %v55_v21 = vld [vmem:[#allocation5 + $0x68] sm:$0xff]  ;;  %v56_v23 = vld [vmem:[#allocation5 + $0x70] sm:$0xff]  ;;  %v57_v24 = vld [vmem:[#allocation5 + $0x78] sm:$0xff] }
  0x2c   :  { %v233_v22 = vpack.c.bf16 %v55_v21, %v54_v20  ;;  %v236_v25 = vpack.c.bf16 %v57_v24, %v56_v23  ;;  %v41_v26 = vld [vmem:[#allocation2] sm:$0xff]  ;;  %p301_p5 = por %p300_p4, %p299_p3 }
  0x2d   :  { %v161_v27 = vld [vmem:[%s398_s2] ss:$0 sm:$0xff] }
  0x2e   :  { %219 = vmatpush3.bf16.msra.mxu0 %v218_v7  ;;  %p302_p6 = pnand %p301_p5, %p295_p2 }
  0x2f   :  { %220 = vmatprep.subr.bf16.mxu0 %v326_v0 }
  0x32   :  { %222 = vmatpush3.bf16.msra.mxu0 %v221_v10 }
  0x33   :  { %223 = vmatprep.subr.bf16.mxu0 %v326_v0 }
  0x36   :  { %225 = vmatpush3.bf16.msra.mxu0 %v224_v13 }
  0x37   :  { %226 = vmatprep.subr.bf16.mxu0 %v326_v0 }
  0x3a   :  { %228 = vmatpush3.bf16.msra.mxu0 %v227_v16 }
  0x3b   :  { %229 = vmatprep.subr.bf16.mxu0 %v326_v0 }
  0x3e   :  { %231 = vmatpush3.bf16.msra.mxu0 %v230_v19 }
  0x3f   :  { %232 = vmatprep.subr.bf16.mxu0 %v326_v0 }
  0x42   :  { %234 = vmatpush3.bf16.msra.mxu0 %v233_v22 }
  0x43   :  { %235 = vmatprep.subr.bf16.mxu0 %v326_v0 }
  0x46   :  { %237 = vmatpush3.bf16.msra.mxu0 %v236_v25 }
  0x49   :  { %212 = vmatmul.mubr.f32.vlgmr.msra.gmra.mrb[0].mxu0 %v41_v26 }
 0x11c   :  { %v131_v28 = vpop.f32.mrb[0].mxu0 }
 0x11d   :  { %v132_v29 = vadd.f32 %v161_v27, %v131_v28  ;;  %v213_v30 = vpop.f32.mrb[1].mxu0 }
 0x11f   :  { %135 = vmax.xlane.f32.xlu0 %v132_v29 }
 0x1ac   :  { %v136_v31 = vpop.xlane.xlu0 %135 }
 0x1ad   :  { %v137_v32 = vsub.f32 %v132_v29, %v136_v31 }
 0x1af   :  { %v138_v33 = vmul.f32 1.442695, %v137_v32 }
 0x1b1   :  { %246 = vpow2.f32 %v138_v33 }
 0x1bb   :  { %v247_v34 = vpop.eup %246 }
 0x1bc   :  { %140 = vadd.xlane.f32.xlu0 %v247_v34 }
 0x249   :  { %v141_v35 = vpop.xlane.xlu0 %140 }
 0x24a   :  { %248 = vrcp.f32 %v141_v35 }
 0x254   :  { %v249_v36 = vpop.eup %248 }
 0x255   :  { %v143_v37 = vmul.f32 %v249_v36, %v247_v34 }
 0x257   :  { %144 = vst [vmem:[#allocation7] sm:$0xff] %v143_v37 }
 0x258   :  { %305 = shalt.err (!%p302_p6)
}
 0x259   :  { %s306_s15 = scalar_lea.hbm %s399_s3, 128 }
 0x25a   :  { %p307_p7 = scmp.ne.s32.totalorder %s399_s3, %s306_s15  ;;  %p310_p8 = scmp.lt.u32.totalorder %s306_s15, %s399_s3 }
 0x25c   :  { %p312_p9 = pnand %p310_p8, %p307_p7 }
 0x25e   :  { %315 = shalt.err (!%p312_p9)
}
 0x25f   :  { %154 = dma.vmem_to_hbm [thread:$0]  %s152_s12, 128, %s399_s3, [#allocation4]  }
 0x260   :  { %320 = dma.done.wait [#allocation4], 128  }
 0x261   :  { %321 = vsyncadd [#allocation4], 4294967168 }
 0x262   :  { %158 = vsyncpa [#allocation3], 1 }
 0x263   :  { %159 = vsyncpa [#allocation6], 1 }
 0x264   :  { %160 = vsyncpa [#allocation4], 1 }

</bundles_post_ra>
